<compile_context>
chip_gen: v7x
topology: tpu7x:2x2x1
jax: 0.10.0
libtpu: 0.0.40
codegen_flags: <defaults>
</compile_context>

<pallas_src>
import functools

import jax
import jax.numpy as jnp
from jax import lax
from jax.experimental import pallas as pl
from jax.experimental.pallas import tpu as pltpu


# ---------------------------------------------------------------------------
# Fused Pallas kernel: whole inception block, one invocation, one output slab.
# ---------------------------------------------------------------------------

def _inception_fused_kernel(x_ref, pos_ref, wred_ref, sred_ref, a_ref, b_ref,
                            sb31_ref, c_ref, wb1_ref, wb4_ref, sall_ref, o_ref,
                            *, seq_len):
    x = x_ref[...]                                   # (NL, Cin) f32
    nl = x.shape[0]
    pos = pos_ref[...]                               # (NL, 1) int32: index within sample
    first = pos == 0
    last = pos == (seq_len - 1)

    def dot(a, b):
        return jnp.dot(a, b, preferred_element_type=jnp.float32)

    def shifts(v):
        # Rows shifted by +-1 within each sample; out-of-sample rows -> 0
        # (matches Conv1d zero padding).  Shared by branches 2 and 3.
        vp = jnp.pad(v, ((1, 1), (0, 0)))
        prev = jnp.where(first, 0.0, vp[0:nl, :])
        nxt = jnp.where(last, 0.0, vp[2:nl + 2, :])
        return prev, nxt

    # Stacked 1x1 "reduce" convs (b2_0 | b3_0), BN folded, ReLU.
    h = jnp.maximum(dot(x, wred_ref[...]) + sred_ref[...], 0.0)     # (NL, R)
    hp, hn = shifts(h)

    # Branch 1 (1x1 conv) contribution, block-placed into its output columns.
    acc = dot(x, wb1_ref[...])                                      # (NL, Ctot)

    # Branch 2: k=3 conv on the b2_0 slice of h (slice selected via zero weight rows).
    acc = acc + dot(hp, a_ref[0]) + dot(h, a_ref[1]) + dot(hn, a_ref[2])

    # Branch 3: k=3 conv + BN + ReLU (b3_1), then k=3 conv (b3_2) into output cols.
    g = jnp.maximum(
        dot(hp, b_ref[0]) + dot(h, b_ref[1]) + dot(hn, b_ref[2]) + sb31_ref[...],
        0.0)                                                        # (NL, n5x5)
    gp, gn = shifts(g)
    acc = acc + dot(gp, c_ref[0]) + dot(g, c_ref[1]) + dot(gn, c_ref[2])

    # Branch 4: MaxPool1d(3, stride=1, padding=1) then 1x1 conv into output cols.
    xp = jnp.pad(x, ((1, 1), (0, 0)))
    x_prev = jnp.where(first, -jnp.inf, xp[0:nl, :])
    x_next = jnp.where(last, -jnp.inf, xp[2:nl + 2, :])
    pooled = jnp.maximum(jnp.maximum(x_prev, x), x_next)
    acc = acc + dot(pooled, wb4_ref[...])

    # Shared affine shift + ReLU epilogue (branch columns are disjoint).
    o_ref[...] = jnp.maximum(acc + sall_ref[...], 0.0)


# ---------------------------------------------------------------------------
# Wrapper-side weight preparation: fold BN, stack reduces, block-place finals.
# ---------------------------------------------------------------------------

def _fold_bn(p):
    scale = p["gamma"] / jnp.sqrt(p["var"] + p["eps"])
    shift = p["beta"] + (p["b"] - p["mean"]) * scale
    return scale.astype(jnp.float32), shift.astype(jnp.float32)


def _folded_1x1(p):
    scale, shift = _fold_bn(p)
    return (p["w"][:, :, 0].T * scale[None, :]).astype(jnp.float32), shift


def _folded_k3(p):
    scale, shift = _fold_bn(p)
    w = jnp.transpose(p["w"], (2, 1, 0)) * scale[None, None, :]     # (3, Cin, Cout)
    return w.astype(jnp.float32), shift


def _place(w, r0, rows, c0, cols):
    out = jnp.zeros((rows, cols), jnp.float32)
    return out.at[r0:r0 + w.shape[0], c0:c0 + w.shape[1]].set(w)


def build_fused_params(P):
    w1, s1 = _folded_1x1(P["b1_0"])
    w20, s20 = _folded_1x1(P["b2_0"])
    w21, s21 = _folded_k3(P["b2_1"])
    w30, s30 = _folded_1x1(P["b3_0"])
    w31, s31 = _folded_k3(P["b3_1"])
    w32, s32 = _folded_k3(P["b3_2"])
    w40, s40 = _folded_1x1(P["b4_0"])

    cin, n1x1 = w1.shape
    n3r, n3x3 = w21.shape[1], w21.shape[2]
    n5r, n5x5 = w31.shape[1], w31.shape[2]
    pool_proj = w40.shape[1]
    r = n3r + n5r
    ctot = n1x1 + n3x3 + n5x5 + pool_proj
    c_b2, c_b3, c_b4 = n1x1, n1x1 + n3x3, n1x1 + n3x3 + n5x5

    return dict(
        W_red=jnp.concatenate([w20, w30], axis=1),                  # (Cin, R)
        s_red=jnp.concatenate([s20, s30])[None, :],                 # (1, R)
        W_b1=_place(w1, 0, cin, 0, ctot),                           # (Cin, Ctot)
        A=jnp.stack([_place(w21[k], 0, r, c_b2, ctot) for k in range(3)]),
        B=jnp.stack([_place(w31[k], n3r, r, 0, n5x5) for k in range(3)]),
        s_b31=s31[None, :],
        C=jnp.stack([_place(w32[k], 0, n5x5, c_b3, ctot) for k in range(3)]),
        W_b4=_place(w40, 0, cin, c_b4, ctot),
        s_all=jnp.concatenate([s1, s21, s32, s40])[None, :],        # (1, Ctot)
        ctot=ctot,
    )


def inception_forward(x_ncl, P):
    N, cin, L = x_ncl.shape
    fp = build_fused_params(P)
    ctot = fp["ctot"]
    nl = N * L

    # NCL -> (N*L, C): rows pack sublanes, channels map to lanes.
    x = jnp.transpose(x_ncl, (0, 2, 1)).astype(jnp.float32).reshape(nl, cin)
    pos = jnp.tile(jnp.arange(L, dtype=jnp.int32), N)[:, None]      # (NL, 1)

    out_flat = pl.pallas_call(
        functools.partial(_inception_fused_kernel, seq_len=L),
        out_shape=jax.ShapeDtypeStruct((nl, ctot), jnp.float32),
        compiler_params=pltpu.CompilerParams(vmem_limit_bytes=32 * 1024 * 1024),
    )(x, pos, fp["W_red"], fp["s_red"], fp["A"], fp["B"], fp["s_b31"],
      fp["C"], fp["W_b1"], fp["W_b4"], fp["s_all"])

    return jnp.transpose(out_flat.reshape(N, L, ctot), (0, 2, 1))   # (N, Ctot, L)


# ---------------------------------------------------------------------------
# Deterministic synthetic parameters (shapes from the PyTorch __init__)
# ---------------------------------------------------------------------------

def _init_conv_bn(key, cin, cout, k, eps=1e-5):
    ks = jax.random.split(key, 6)
    return dict(
        w=0.2 * jax.random.normal(ks[0], (cout, cin, k), jnp.float32),
        b=0.1 * jax.random.normal(ks[1], (cout,), jnp.float32),
        gamma=1.0 + 0.1 * jax.random.normal(ks[2], (cout,), jnp.float32),
        beta=0.1 * jax.random.normal(ks[3], (cout,), jnp.float32),
        mean=0.1 * jax.random.normal(ks[4], (cout,), jnp.float32),
        var=0.5 + jax.nn.softplus(jax.random.normal(ks[5], (cout,), jnp.float32)),
        eps=jnp.float32(eps),
    )


def init_inception(key, in_ch, n1x1, n3x3_reduce, n3x3, n5x5_reduce, n5x5, pool_proj):
    ks = jax.random.split(key, 7)
    return dict(
        b1_0=_init_conv_bn(ks[0], in_ch, n1x1, 1),
        b2_0=_init_conv_bn(ks[1], in_ch, n3x3_reduce, 1),
        b2_1=_init_conv_bn(ks[2], n3x3_reduce, n3x3, 3),
        b3_0=_init_conv_bn(ks[3], in_ch, n5x5_reduce, 1),
        # NOTE: original code writes nn.BatchNorm1d(n5x5, n5x5); the 2nd positional
        # arg is `eps`, so this BN uses eps = n5x5.  Reproduced here.
        b3_1=_init_conv_bn(ks[4], n5x5_reduce, n5x5, 3, eps=float(n5x5)),
        b3_2=_init_conv_bn(ks[5], n5x5, n5x5, 3),
        b4_0=_init_conv_bn(ks[6], in_ch, pool_proj, 1),
    )


# ---------------------------------------------------------------------------
# Pure-JAX reference (NCL, same semantics as PyTorch eval-mode module)
# ---------------------------------------------------------------------------

def _conv_bn_relu_ref(x, p, pad):
    y = lax.conv_general_dilated(x, p["w"], (1,), [(pad, pad)],
                                 dimension_numbers=("NCH", "OIH", "NCH"))
    y = y + p["b"][None, :, None]
    y = (y - p["mean"][None, :, None]) / jnp.sqrt(p["var"][None, :, None] + p["eps"])
    y = y * p["gamma"][None, :, None] + p["beta"][None, :, None]
    return jnp.maximum(y, 0.0)


def _maxpool3_ref(x):
    return lax.reduce_window(x, -jnp.inf, lax.max, (1, 1, 3), (1, 1, 1),
                             [(0, 0), (0, 0), (1, 1)])


def inception_ref(x, P):
    b1 = _conv_bn_relu_ref(x, P["b1_0"], 0)
    b2 = _conv_bn_relu_ref(_conv_bn_relu_ref(x, P["b2_0"], 0), P["b2_1"], 1)
    b3 = _conv_bn_relu_ref(
        _conv_bn_relu_ref(_conv_bn_relu_ref(x, P["b3_0"], 0), P["b3_1"], 1),
        P["b3_2"], 1)
    b4 = _conv_bn_relu_ref(_maxpool3_ref(x), P["b4_0"], 0)
    return jnp.concatenate([b1, b2, b3, b4], axis=1)


if __name__ == "__main__":
    key = jax.random.PRNGKey(0)
    kx, kp = jax.random.split(key)

    N, C, L = 2, 4, 16
    n1x1, n3x3_reduce, n3x3, n5x5_reduce, n5x5, pool_proj = 8, 4, 8, 4, 8, 8

    x = jax.random.normal(kx, (N, C, L), jnp.float32)
    params = init_inception(kp, C, n1x1, n3x3_reduce, n3x3, n5x5_reduce, n5x5, pool_proj)

    out = jax.block_until_ready(inception_forward(x, params))
    ref = jax.block_until_ready(inception_ref(x, params))

    assert out.shape == (N, n1x1 + n3x3 + n5x5 + pool_proj, L), out.shape
    max_err = float(jnp.max(jnp.abs(out - ref)))
    assert jnp.allclose(out, ref, atol=1e-4, rtol=1e-4), max_err

    print("KERNEL_OK")
</pallas_src>

<mosaic_0001>
module attributes {stable_mosaic.version = 11 : i64} {
  func.func @_inception_fused_kernel(%arg0: memref<32x4xf32, #tpu.memory_space<vmem>>, %arg1: memref<32x1xi32, #tpu.memory_space<vmem>>, %arg2: memref<4x8xf32, #tpu.memory_space<vmem>>, %arg3: memref<1x8xf32, #tpu.memory_space<vmem>>, %arg4: memref<3x8x32xf32, #tpu.memory_space<vmem>>, %arg5: memref<3x8x8xf32, #tpu.memory_space<vmem>>, %arg6: memref<1x8xf32, #tpu.memory_space<vmem>>, %arg7: memref<3x8x32xf32, #tpu.memory_space<vmem>>, %arg8: memref<4x32xf32, #tpu.memory_space<vmem>>, %arg9: memref<4x32xf32, #tpu.memory_space<vmem>>, %arg10: memref<1x32xf32, #tpu.memory_space<vmem>>, %arg11: memref<32x32xf32, #tpu.memory_space<vmem>>) attributes {dimension_semantics = [], scalar_prefetch = 0 : i64, scratch_operands = 0 : i64, tpu.core_type = #tpu.core_type<tc>} {
    %c0 = arith.constant 0 : index
    %c0_0 = arith.constant 0 : index
    %0 = vector.load %arg0[%c0, %c0_0] : memref<32x4xf32, #tpu.memory_space<vmem>>, vector<32x4xf32>
    %c0_1 = arith.constant 0 : index
    %c0_2 = arith.constant 0 : index
    %1 = vector.load %arg1[%c0_1, %c0_2] : memref<32x1xi32, #tpu.memory_space<vmem>>, vector<32x1xi32>
    %c0_i32 = arith.constant 0 : i32
    %2 = vector.broadcast %c0_i32 : i32 to vector<32x1xi32>
    %3 = arith.cmpi eq, %1, %2 : vector<32x1xi32>
    %c15_i32 = arith.constant 15 : i32
    %4 = vector.broadcast %c15_i32 : i32 to vector<32x1xi32>
    %5 = arith.cmpi eq, %1, %4 : vector<32x1xi32>
    %c0_3 = arith.constant 0 : index
    %c0_4 = arith.constant 0 : index
    %6 = vector.load %arg2[%c0_3, %c0_4] : memref<4x8xf32, #tpu.memory_space<vmem>>, vector<4x8xf32>
    %cst = arith.constant dense<0.000000e+00> : vector<32x8xf32>
    %7 = tpu.matmul %0, %6, %cst {dimension_numbers = #tpu.dot_dimension_numbers<[1], [0], [0], [1], [0, 0, 1, 1], [], []>} : vector<32x4xf32>, vector<4x8xf32>, vector<32x8xf32> -> vector<32x8xf32>
    %c0_5 = arith.constant 0 : index
    %c0_6 = arith.constant 0 : index
    %8 = vector.load %arg3[%c0_5, %c0_6] : memref<1x8xf32, #tpu.memory_space<vmem>>, vector<1x8xf32>
    %9 = vector.broadcast %8 : vector<1x8xf32> to vector<32x8xf32>
    %10 = arith.addf %7, %9 : vector<32x8xf32>
    %cst_7 = arith.constant 0.000000e+00 : f32
    %11 = vector.broadcast %cst_7 : f32 to vector<32x8xf32>
    %12 = arith.maximumf %10, %11 : vector<32x8xf32>
    %c0_i32_8 = arith.constant 0 : i32
    %13 = arith.sitofp %c0_i32_8 : i32 to f32
    %14 = vector.broadcast %13 : f32 to vector<1x8xf32>
    %15 = tpu.concatenate %14, %12 in 0 : vector<1x8xf32>, vector<32x8xf32> -> vector<33x8xf32>
    %16 = vector.broadcast %13 : f32 to vector<1x8xf32>
    %17 = tpu.concatenate %15, %16 in 0 : vector<33x8xf32>, vector<1x8xf32> -> vector<34x8xf32>
    %18 = vector.extract_strided_slice %17 {offsets = [0, 0], sizes = [32, 8], strides = [1, 1]} : vector<34x8xf32> to vector<32x8xf32>
    %cst_9 = arith.constant 0.000000e+00 : f32
    %19 = vector.shape_cast %3 : vector<32x1xi1> to vector<32x1xi1>
    %20 = vector.broadcast %19 : vector<32x1xi1> to vector<32x8xi1>
    %21 = vector.broadcast %cst_9 : f32 to vector<32x8xf32>
    %22 = arith.select %20, %21, %18 : vector<32x8xi1>, vector<32x8xf32>
    %23 = vector.extract_strided_slice %17 {offsets = [2, 0], sizes = [32, 8], strides = [1, 1]} : vector<34x8xf32> to vector<32x8xf32>
    %cst_10 = arith.constant 0.000000e+00 : f32
    %24 = vector.shape_cast %5 : vector<32x1xi1> to vector<32x1xi1>
    %25 = vector.broadcast %24 : vector<32x1xi1> to vector<32x8xi1>
    %26 = vector.broadcast %cst_10 : f32 to vector<32x8xf32>
    %27 = arith.select %25, %26, %23 : vector<32x8xi1>, vector<32x8xf32>
    %c0_11 = arith.constant 0 : index
    %c0_12 = arith.constant 0 : index
    %28 = vector.load %arg8[%c0_11, %c0_12] : memref<4x32xf32, #tpu.memory_space<vmem>>, vector<4x32xf32>
    %cst_13 = arith.constant dense<0.000000e+00> : vector<32x32xf32>
    %29 = tpu.matmul %0, %28, %cst_13 {dimension_numbers = #tpu.dot_dimension_numbers<[1], [0], [0], [1], [0, 0, 1, 1], [], []>} : vector<32x4xf32>, vector<4x32xf32>, vector<32x32xf32> -> vector<32x32xf32>
    %c0_14 = arith.constant 0 : index
    %c0_15 = arith.constant 0 : index
    %c0_16 = arith.constant 0 : index
    %30 = vector.load %arg4[%c0_14, %c0_15, %c0_16] : memref<3x8x32xf32, #tpu.memory_space<vmem>>, vector<1x8x32xf32>
    %31 = vector.shape_cast %30 : vector<1x8x32xf32> to vector<8x32xf32>
    %cst_17 = arith.constant dense<0.000000e+00> : vector<32x32xf32>
    %32 = tpu.matmul %22, %31, %cst_17 {dimension_numbers = #tpu.dot_dimension_numbers<[1], [0], [0], [1], [0, 0, 1, 1], [], []>} : vector<32x8xf32>, vector<8x32xf32>, vector<32x32xf32> -> vector<32x32xf32>
    %33 = arith.addf %29, %32 : vector<32x32xf32>
    %c1 = arith.constant 1 : index
    %c0_18 = arith.constant 0 : index
    %c0_19 = arith.constant 0 : index
    %34 = vector.load %arg4[%c1, %c0_18, %c0_19] : memref<3x8x32xf32, #tpu.memory_space<vmem>>, vector<1x8x32xf32>
    %35 = vector.shape_cast %34 : vector<1x8x32xf32> to vector<8x32xf32>
    %cst_20 = arith.constant dense<0.000000e+00> : vector<32x32xf32>
    %36 = tpu.matmul %12, %35, %cst_20 {dimension_numbers = #tpu.dot_dimension_numbers<[1], [0], [0], [1], [0, 0, 1, 1], [], []>} : vector<32x8xf32>, vector<8x32xf32>, vector<32x32xf32> -> vector<32x32xf32>
    %37 = arith.addf %33, %36 : vector<32x32xf32>
    %c2 = arith.constant 2 : index
    %c0_21 = arith.constant 0 : index
    %c0_22 = arith.constant 0 : index
    %38 = vector.load %arg4[%c2, %c0_21, %c0_22] : memref<3x8x32xf32, #tpu.memory_space<vmem>>, vector<1x8x32xf32>
    %39 = vector.shape_cast %38 : vector<1x8x32xf32> to vector<8x32xf32>
    %cst_23 = arith.constant dense<0.000000e+00> : vector<32x32xf32>
    %40 = tpu.matmul %27, %39, %cst_23 {dimension_numbers = #tpu.dot_dimension_numbers<[1], [0], [0], [1], [0, 0, 1, 1], [], []>} : vector<32x8xf32>, vector<8x32xf32>, vector<32x32xf32> -> vector<32x32xf32>
    %41 = arith.addf %37, %40 : vector<32x32xf32>
    %c0_24 = arith.constant 0 : index
    %c0_25 = arith.constant 0 : index
    %c0_26 = arith.constant 0 : index
    %42 = vector.load %arg5[%c0_24, %c0_25, %c0_26] : memref<3x8x8xf32, #tpu.memory_space<vmem>>, vector<1x8x8xf32>
    %43 = vector.shape_cast %42 : vector<1x8x8xf32> to vector<8x8xf32>
    %cst_27 = arith.constant dense<0.000000e+00> : vector<32x8xf32>
    %44 = tpu.matmul %22, %43, %cst_27 {dimension_numbers = #tpu.dot_dimension_numbers<[1], [0], [0], [1], [0, 0, 1, 1], [], []>} : vector<32x8xf32>, vector<8x8xf32>, vector<32x8xf32> -> vector<32x8xf32>
    %c1_28 = arith.constant 1 : index
    %c0_29 = arith.constant 0 : index
    %c0_30 = arith.constant 0 : index
    %45 = vector.load %arg5[%c1_28, %c0_29, %c0_30] : memref<3x8x8xf32, #tpu.memory_space<vmem>>, vector<1x8x8xf32>
    %46 = vector.shape_cast %45 : vector<1x8x8xf32> to vector<8x8xf32>
    %cst_31 = arith.constant dense<0.000000e+00> : vector<32x8xf32>
    %47 = tpu.matmul %12, %46, %cst_31 {dimension_numbers = #tpu.dot_dimension_numbers<[1], [0], [0], [1], [0, 0, 1, 1], [], []>} : vector<32x8xf32>, vector<8x8xf32>, vector<32x8xf32> -> vector<32x8xf32>
    %48 = arith.addf %44, %47 : vector<32x8xf32>
    %c2_32 = arith.constant 2 : index
    %c0_33 = arith.constant 0 : index
    %c0_34 = arith.constant 0 : index
    %49 = vector.load %arg5[%c2_32, %c0_33, %c0_34] : memref<3x8x8xf32, #tpu.memory_space<vmem>>, vector<1x8x8xf32>
    %50 = vector.shape_cast %49 : vector<1x8x8xf32> to vector<8x8xf32>
    %cst_35 = arith.constant dense<0.000000e+00> : vector<32x8xf32>
    %51 = tpu.matmul %27, %50, %cst_35 {dimension_numbers = #tpu.dot_dimension_numbers<[1], [0], [0], [1], [0, 0, 1, 1], [], []>} : vector<32x8xf32>, vector<8x8xf32>, vector<32x8xf32> -> vector<32x8xf32>
    %52 = arith.addf %48, %51 : vector<32x8xf32>
    %c0_36 = arith.constant 0 : index
    %c0_37 = arith.constant 0 : index
    %53 = vector.load %arg6[%c0_36, %c0_37] : memref<1x8xf32, #tpu.memory_space<vmem>>, vector<1x8xf32>
    %54 = vector.broadcast %53 : vector<1x8xf32> to vector<32x8xf32>
    %55 = arith.addf %52, %54 : vector<32x8xf32>
    %cst_38 = arith.constant 0.000000e+00 : f32
    %56 = vector.broadcast %cst_38 : f32 to vector<32x8xf32>
    %57 = arith.maximumf %55, %56 : vector<32x8xf32>
    %c0_i32_39 = arith.constant 0 : i32
    %58 = arith.sitofp %c0_i32_39 : i32 to f32
    %59 = vector.broadcast %58 : f32 to vector<1x8xf32>
    %60 = tpu.concatenate %59, %57 in 0 : vector<1x8xf32>, vector<32x8xf32> -> vector<33x8xf32>
    %61 = vector.broadcast %58 : f32 to vector<1x8xf32>
    %62 = tpu.concatenate %60, %61 in 0 : vector<33x8xf32>, vector<1x8xf32> -> vector<34x8xf32>
    %63 = vector.extract_strided_slice %62 {offsets = [0, 0], sizes = [32, 8], strides = [1, 1]} : vector<34x8xf32> to vector<32x8xf32>
    %cst_40 = arith.constant 0.000000e+00 : f32
    %64 = vector.shape_cast %3 : vector<32x1xi1> to vector<32x1xi1>
    %65 = vector.broadcast %64 : vector<32x1xi1> to vector<32x8xi1>
    %66 = vector.broadcast %cst_40 : f32 to vector<32x8xf32>
    %67 = arith.select %65, %66, %63 : vector<32x8xi1>, vector<32x8xf32>
    %68 = vector.extract_strided_slice %62 {offsets = [2, 0], sizes = [32, 8], strides = [1, 1]} : vector<34x8xf32> to vector<32x8xf32>
    %cst_41 = arith.constant 0.000000e+00 : f32
    %69 = vector.shape_cast %5 : vector<32x1xi1> to vector<32x1xi1>
    %70 = vector.broadcast %69 : vector<32x1xi1> to vector<32x8xi1>
    %71 = vector.broadcast %cst_41 : f32 to vector<32x8xf32>
    %72 = arith.select %70, %71, %68 : vector<32x8xi1>, vector<32x8xf32>
    %c0_42 = arith.constant 0 : index
    %c0_43 = arith.constant 0 : index
    %c0_44 = arith.constant 0 : index
    %73 = vector.load %arg7[%c0_42, %c0_43, %c0_44] : memref<3x8x32xf32, #tpu.memory_space<vmem>>, vector<1x8x32xf32>
    %74 = vector.shape_cast %73 : vector<1x8x32xf32> to vector<8x32xf32>
    %cst_45 = arith.constant dense<0.000000e+00> : vector<32x32xf32>
    %75 = tpu.matmul %67, %74, %cst_45 {dimension_numbers = #tpu.dot_dimension_numbers<[1], [0], [0], [1], [0, 0, 1, 1], [], []>} : vector<32x8xf32>, vector<8x32xf32>, vector<32x32xf32> -> vector<32x32xf32>
    %76 = arith.addf %41, %75 : vector<32x32xf32>
    %c1_46 = arith.constant 1 : index
    %c0_47 = arith.constant 0 : index
    %c0_48 = arith.constant 0 : index
    %77 = vector.load %arg7[%c1_46, %c0_47, %c0_48] : memref<3x8x32xf32, #tpu.memory_space<vmem>>, vector<1x8x32xf32>
    %78 = vector.shape_cast %77 : vector<1x8x32xf32> to vector<8x32xf32>
    %cst_49 = arith.constant dense<0.000000e+00> : vector<32x32xf32>
    %79 = tpu.matmul %57, %78, %cst_49 {dimension_numbers = #tpu.dot_dimension_numbers<[1], [0], [0], [1], [0, 0, 1, 1], [], []>} : vector<32x8xf32>, vector<8x32xf32>, vector<32x32xf32> -> vector<32x32xf32>
    %80 = arith.addf %76, %79 : vector<32x32xf32>
    %c2_50 = arith.constant 2 : index
    %c0_51 = arith.constant 0 : index
    %c0_52 = arith.constant 0 : index
    %81 = vector.load %arg7[%c2_50, %c0_51, %c0_52] : memref<3x8x32xf32, #tpu.memory_space<vmem>>, vector<1x8x32xf32>
    %82 = vector.shape_cast %81 : vector<1x8x32xf32> to vector<8x32xf32>
    %cst_53 = arith.constant dense<0.000000e+00> : vector<32x32xf32>
    %83 = tpu.matmul %72, %82, %cst_53 {dimension_numbers = #tpu.dot_dimension_numbers<[1], [0], [0], [1], [0, 0, 1, 1], [], []>} : vector<32x8xf32>, vector<8x32xf32>, vector<32x32xf32> -> vector<32x32xf32>
    %84 = arith.addf %80, %83 : vector<32x32xf32>
    %c0_i32_54 = arith.constant 0 : i32
    %85 = arith.sitofp %c0_i32_54 : i32 to f32
    %86 = vector.broadcast %85 : f32 to vector<1x4xf32>
    %87 = tpu.concatenate %86, %0 in 0 : vector<1x4xf32>, vector<32x4xf32> -> vector<33x4xf32>
    %88 = vector.broadcast %85 : f32 to vector<1x4xf32>
    %89 = tpu.concatenate %87, %88 in 0 : vector<33x4xf32>, vector<1x4xf32> -> vector<34x4xf32>
    %90 = vector.extract_strided_slice %89 {offsets = [0, 0], sizes = [32, 4], strides = [1, 1]} : vector<34x4xf32> to vector<32x4xf32>
    %cst_55 = arith.constant 0xFF800000 : f32
    %91 = vector.shape_cast %3 : vector<32x1xi1> to vector<32x1xi1>
    %92 = vector.broadcast %91 : vector<32x1xi1> to vector<32x4xi1>
    %93 = vector.broadcast %cst_55 : f32 to vector<32x4xf32>
    %94 = arith.select %92, %93, %90 : vector<32x4xi1>, vector<32x4xf32>
    %95 = vector.extract_strided_slice %89 {offsets = [2, 0], sizes = [32, 4], strides = [1, 1]} : vector<34x4xf32> to vector<32x4xf32>
    %cst_56 = arith.constant 0xFF800000 : f32
    %96 = vector.shape_cast %5 : vector<32x1xi1> to vector<32x1xi1>
    %97 = vector.broadcast %96 : vector<32x1xi1> to vector<32x4xi1>
    %98 = vector.broadcast %cst_56 : f32 to vector<32x4xf32>
    %99 = arith.select %97, %98, %95 : vector<32x4xi1>, vector<32x4xf32>
    %100 = arith.maximumf %94, %0 : vector<32x4xf32>
    %101 = arith.maximumf %100, %99 : vector<32x4xf32>
    %c0_57 = arith.constant 0 : index
    %c0_58 = arith.constant 0 : index
    %102 = vector.load %arg9[%c0_57, %c0_58] : memref<4x32xf32, #tpu.memory_space<vmem>>, vector<4x32xf32>
    %cst_59 = arith.constant dense<0.000000e+00> : vector<32x32xf32>
    %103 = tpu.matmul %101, %102, %cst_59 {dimension_numbers = #tpu.dot_dimension_numbers<[1], [0], [0], [1], [0, 0, 1, 1], [], []>} : vector<32x4xf32>, vector<4x32xf32>, vector<32x32xf32> -> vector<32x32xf32>
    %104 = arith.addf %84, %103 : vector<32x32xf32>
    %c0_60 = arith.constant 0 : index
    %c0_61 = arith.constant 0 : index
    %105 = vector.load %arg10[%c0_60, %c0_61] : memref<1x32xf32, #tpu.memory_space<vmem>>, vector<1x32xf32>
    %106 = vector.broadcast %105 : vector<1x32xf32> to vector<32x32xf32>
    %107 = arith.addf %104, %106 : vector<32x32xf32>
    %cst_62 = arith.constant 0.000000e+00 : f32
    %108 = vector.broadcast %cst_62 : f32 to vector<32x32xf32>
    %109 = arith.maximumf %107, %108 : vector<32x32xf32>
    %c0_63 = arith.constant 0 : index
    %c0_64 = arith.constant 0 : index
    %110 = vector.load %arg11[%c0_63, %c0_64] : memref<32x32xf32, #tpu.memory_space<vmem>>, vector<32x32xf32>
    tpu.vector_store %arg11[%c0_63, %c0_64], %109 {strides = array<i32>} : memref<32x32xf32, #tpu.memory_space<vmem>>, vector<32x32xf32>,
    return
  }
}

</mosaic_0001>

<bundles_post_ra>
// kernel: tpu_custom_call.1
= control target key start
LH: loop header
LB: loop body
LE: loop exit
PB: predicated region body
PF: predicated region fallthrough
CT: control target
= control target key end

     0   :  { %16 = vsyncpa [#allocation3], 0  ;;  %s2135_s0 = inlined_call_operand.vmem [shape: f32[32,4], index: 0, kind: input, shape index: {}]   ;;  %s2136_s1 = inlined_call_operand.vmem [shape: s32[32,1], index: 1, kind: input, shape index: {}]   ;;  %s2137_s2 = inlined_call_operand.vmem [shape: f32[4,8], index: 2, kind: input, shape index: {}]   ;;  %s2138_s3 = inlined_call_operand.hbm [shape: f32[1,8], index: 3, kind: input, shape index: {}]   ;;  %s2139_s4 = inlined_call_operand.vmem [shape: f32[3,8,32], index: 4, kind: input, shape index: {}]   ;;  %s2140_s5 = inlined_call_operand.vmem [shape: f32[3,8,8], index: 5, kind: input, shape index: {}]   ;;  %s2141_s6 = inlined_call_operand.vmem [shape: f32[1,8], index: 6, kind: input, shape index: {}]   ;;  %s2142_s7 = inlined_call_operand.vmem [shape: f32[3,8,32], index: 7, kind: input, shape index: {}]   ;;  %s2143_s8 = inlined_call_operand.vmem [shape: f32[4,32], index: 8, kind: input, shape index: {}]   ;;  %s2144_s9 = inlined_call_operand.vmem [shape: f32[4,32], index: 9, kind: input, shape index: {}]   ;;  %s2145_s10 = inlined_call_operand.vmem [shape: f32[1,32], index: 10, kind: input, shape index: {}]   ;;  %s2146_s11 = inlined_call_operand.hbm [shape: f32[32,32], index: 11, kind: output, shape index: {}]  }
   0x1   :  { %17 = vsyncpa [#allocation4], 0  ;;  %s1772_s17 = smov [#allocation2]   ;;  %s1724_s21 = scalar_lea.hbm %s2138_s3, 16 }
   0x2   :  { %s30_s18 = sshll.u32 %s1772_s17, 4  ;;  %p1725_p0 = scmp.ne.s32.totalorder %s2138_s3, %s1724_s21  ;;  %s31_s18 = int_to_ptr.vmem [resolvable:$true] %s30_s18 }
   0x3   :  { %p1728_p1 = scmp.lt.u32.totalorder %s1724_s21, %s2138_s3 }
   0x5   :  { %p1730_p2 = pnand %p1728_p1, %p1725_p0 }
   0x7   :  { %1733 = shalt.err (!%p1730_p2)
}
   0x8   :  { %s1734_s26 = scalar_lea.vmem %s31_s18, 16  ;;  %s1738_s27 = scalar_lea.vmem %s31_s18, 32 }
   0x9   :  { %p1735_p3 = scmp.ne.s32.totalorder %s31_s18, %s1734_s26  ;;  %p1739_p4 = scmp.lt.s32.totalorder %s31_s18, %s31_s18 }
   0xa   :  { %p1740_p5 = scmp.lt.s32.totalorder %s1738_s27, %s1734_s26 }
   0xc   :  { %p1741_p6 = por %p1740_p5, %p1739_p4 }
   0xe   :  { %p1742_p7 = pnand %p1741_p6, %p1735_p3 }
  0x10   :  { %1745 = shalt.err (!%p1742_p7)
}
  0x11   :  { %33 = dma.hbm_to_vmem [thread:$0]  %s2138_s3, 16, %s31_s18, [#allocation3]  }
  0x12   :  { %1768 = dma.done.wait [#allocation3], 16  }
  0x13   :  { %1769 = vsyncadd [#allocation3], 4294967280  ;;  %v1773_v0 = vmov 0   ;;  %vm88_vm0 = vcmask 1043456   ;;  %vm75_vm1 = vcmask 31744   ;;  %v1855_v2 = vld [vmem:[%s2135_s0] sm:$0xff] }
  0x14   :  { %1722 = vset.pattern.permute.xlu0 %v1773_v0  ;;  %1723 = vset.pattern.permute.xlu1 %v1773_v0  ;;  %v67_v1 = vld [vmem:[%s2137_s2] sm:$0xf]  ;;  %v1860_v3 = vld [vmem:[%s2135_s0 + $0x8] sm:$0xff]  ;;  %v1868_v4 = vld [vmem:[%s2135_s0 + $0x10] sm:$0xff]  ;;  %vm266_vm10 = vcmask 64512   ;;  %vm185_vm11 = vcmask 1040384  }
  0x15   :  { %1585 = vmatprep.subr.msk.mxu0 %vm88_vm0, %v67_v1  ;;  %1587 = vmatprep.mubr.msk.f32.mxu0 %vm75_vm1, %v1855_v2  ;;  %v55_v5 = vld [vmem:[%s2136_s1] sm:$0xff]  ;;  %v57_v6 = vld [vmem:[%s2136_s1 + $0x10] sm:$0xff]  ;;  %v56_v7 = vld [vmem:[%s2136_s1 + $0x8] sm:$0xff]  ;;  %vm246_vm14 = vcmask 1045504  }
  0x16   :  { %1586 = vmatpush3.msk.msra.mxu0 %vm88_vm0, %v67_v1  ;;  %vm59_vm2 = vcmp.eq.s32.totalorder %v55_v5, 0  ;;  %v58_v8 = vld [vmem:[%s2136_s1 + $0x18] sm:$0xff]  ;;  %vm61_vm3 = vcmp.eq.s32.totalorder %v57_v6, 0  ;;  %vm60_vm4 = vcmp.eq.s32.totalorder %v56_v7, 0  ;;  %vm63_vm6 = vcmp.eq.s32.totalorder %v55_v5, 15  ;;  %v1480_v18 = vld [vmem:[%s2139_s4 + $0x8] sm:$0xff] }
  0x17   :  { %1588 = vmatmul.mubr.msk.f32.vlgmr.msra.gmra.mrb[0].mxu0 %vm75_vm1, %v1860_v3  ;;  %v200_v9 = vsel %vm59_vm2, 1, %v1773_v0  ;;  %vm62_vm5 = vcmp.eq.s32.totalorder %v58_v8, 0  ;;  %v1890_v10 = vld [vmem:[%s2135_s0 + $0x18] sm:$0xff]  ;;  %v202_v11 = vsel %vm61_vm3, 1, %v1773_v0  ;;  %v201_v12 = vsel %vm60_vm4, 1, %v1773_v0  ;;  %1609 = vmatprep.subr.mxu1 %v1480_v18  ;;  %v265_v19 = vld [vmem:[%s2139_s4] sm:$0xff] }
  0x18   :  { %1590 = vmatprep.mubr.msk.f32.mxu0 %vm75_vm1, %v1868_v4  ;;  %205 = vperm.xlu0 %1722, %v200_v9   ;;  %v203_v13 = vsel %vm62_vm5, 1, %v1773_v0  ;;  %vm64_vm7 = vcmp.eq.s32.totalorder %v56_v7, 15  ;;  %v224_v14 = vsel %vm63_vm6, 1, %v1773_v0  ;;  %vm65_vm8 = vcmp.eq.s32.totalorder %v57_v6, 15  ;;  %v1485_v20 = vld [vmem:[%s2139_s4 + $0x10] sm:$0xff]  ;;  %v1490_v51 = vld [vmem:[%s2140_s5 + $0x8] sm:$0xff] }
  0x19   :  { %211 = vperm.xlu1 %1723, %v202_v11   ;;  %v225_v15 = vsel %vm64_vm7, 1, %v1773_v0  ;;  %vm66_vm9 = vcmp.eq.s32.totalorder %v58_v8, 15  ;;  %v226_v16 = vsel %vm65_vm8, 1, %v1773_v0  ;;  %1610 = vmatpush3.msra.mxu1 %v1480_v18  ;;  %v264_v21 = vld [vmem:[%s2143_s8] sm:$0xf]  ;;  %v1499_v11 = vld [vmem:[%s2140_s5 + $0x10] sm:$0xff] }
  0x1a   :  { %v227_v17 = vsel %vm66_vm9, 1, %v1773_v0  ;;  %1593 = vmatprep.subr.mxu0 %v265_v19  ;;  %1617 = vmatprep.subr.mxu1 %v1485_v20  ;;  %v1465_v24 = vld [vmem:[#allocation2] ss:$0 sm:$0xff]  ;;  %v654_v8 = vld [vmem:[%s2140_s5] sm:$0xff] }
  0x1b   :  { %1591 = vmatmul.mubr.msk.f32.gmra.mrb[2].mxu0 %vm75_vm1, %v1890_v10  ;;  %v1504_v18 = vld [vmem:[%s2141_s6] ss:$0 sm:$0xff] }
  0x1c   :  { %208 = vperm.xlu0 %1722, %v201_v12   ;;  %1594 = vmatpush3.msra.mxu0 %v265_v19  ;;  %v974_v12 = vld [vmem:[%s2142_s7] sm:$0xff] }
  0x1d   :  { %214 = vperm.xlu1 %1723, %v203_v13   ;;  %1601 = vmatprep.subr.msk.mxu0 %vm88_vm0, %v264_v21  ;;  %v1509_v13 = vld [vmem:[%s2142_s7 + $0x8] sm:$0xff] }
  0x20   :  { %229 = vperm.xlu0 %1722, %v224_v14  }
  0x21   :  { %232 = vperm.xlu1 %1723, %v225_v15  }
  0x24   :  { %235 = vperm.xlu0 %1722, %v226_v16  }
  0x25   :  { %238 = vperm.xlu1 %1723, %v227_v17  }
  0x97   :  { %v1907_v22 = vpop.permute.xlu0 %205 }
  0x98   :  { %v1909_v23 = vpop.permute.xlu1 %211  ;;  %vm216_vm12 = vcmp.eq.s32.totalorder %v1907_v22, 1 }
  0x99   :  { %vm218_vm15 = vcmp.eq.s32.totalorder %v1909_v23, 1 }
  0x9b   :  { %v1911_v25 = vpop.permute.xlu0 %208 }
  0x9c   :  { %v1915_v31 = vpop.permute.xlu1 %214  ;;  %vm217_vm13 = vcmp.eq.s32.totalorder %v1911_v25, 1 }
  0x9d   :  { %vm219_vm2 = vcmp.eq.s32.totalorder %v1915_v31, 1 }
  0x9f   :  { %v1920_v37 = vpop.permute.xlu0 %229 }
  0xa0   :  { %v1938_v48 = vpop.permute.xlu1 %232  ;;  %vm240_vm3 = vcmp.eq.s32.totalorder %v1920_v37, 1 }
  0xa1   :  { %vm241_vm4 = vcmp.eq.s32.totalorder %v1938_v48, 1 }
  0xa3   :  { %v1952_v53 = vpop.permute.xlu0 %235 }
  0xa4   :  { %vm242_vm5 = vcmp.eq.s32.totalorder %v1952_v53, 1  ;;  %v1972_v5 = vpop.permute.xlu1 %238 }
  0xa5   :  { %vm243_vm6 = vcmp.eq.s32.totalorder %v1972_v5, 1 }
  0xea   :  { %v1589_v26 = vpop.f32.mrb[0].mxu0 }
  0xeb   :  { %v164_v27 = vadd.f32 %v1589_v26, %v1465_v24  ;;  %v158_v28 = vpop.f32.mrb[1].mxu0 }
  0xec   :  { %v159_v29 = vadd.f32 %v1465_v24, %v158_v28 }
  0xed   :  { %v1913_v30 = vmax.f32 %v164_v27, 0.0 }
  0xee   :  { %v1917_v32 = vmax.f32 %v159_v29, 0.0  ;;  %v1592_v33 = vpop.f32.mrb[2].mxu0 }
  0xef   :  { %v187_v34 = vrot.slane %v1913_v30, 7  ;;  %v174_v35 = vadd.f32 %v1592_v33, %v1465_v24  ;;  %v168_v36 = vpop.f32.mrb[3].mxu0 }
  0xf0   :  { %v186_v38 = vrot.slane %v1917_v32, 7  ;;  %v169_v39 = vadd.f32 %v1465_v24, %v168_v36  ;;  %1611 = vmatprep.mubr.msk.f32.mxu1 %vm266_vm10, %v1917_v32 }
  0xf1   :  { %v1926_v40 = vmax.f32 %v174_v35, 0.0  ;;  %1612 = vmatmul.mubr.msk.f32.vlgmr.msra.gmra.mrb[0].mxu1 %vm266_vm10, %v1913_v30 }
  0xf2   :  { %v179_v41 = vmax.f32 %v169_v39, 0.0  ;;  %v198_v42 = vsel %vm185_vm11, 0.0, %v186_v38  ;;  %v188_v43 = vsel %vm185_vm11, %v186_v38, %v187_v34  ;;  %1618 = vmatpush3.msra.mxu1 %v1485_v20 }
  0xf3   :  { %v191_v44 = vrot.slane %v1926_v40, 7  ;;  %v220_v45 = vsel %vm216_vm12, 0.0, %v198_v42  ;;  %v247_v46 = vrot.slane %v198_v42, 2  ;;  %v221_v47 = vsel %vm217_vm13, 0.0, %v188_v43  ;;  %1649 = vmatprep.subr.mxu1 %v974_v12 }
  0xf4   :  { %v189_v49 = vrot.slane %v179_v41, 7  ;;  %1595 = vmatprep.mubr.msk.f32.mxu0 %vm266_vm10, %v220_v45  ;;  %1614 = vmatprep.mubr.msk.f32.mxu1 %vm266_vm10, %v179_v41  ;;  %v248_v50 = vrot.slane %v188_v43, 2 }
  0xf5   :  { %v199_v52 = vsel %vm185_vm11, %v191_v44, 0.0  ;;  %1596 = vmatmul.mubr.msk.f32.vlgmr.msra.gmra.mrb[4].mxu0 %vm266_vm10, %v221_v47  ;;  %1615 = vmatmul.mubr.msk.f32.gmra.mrb[2].mxu1 %vm266_vm10, %v1926_v40 }
  0xf6   :  { %v192_v54 = vsel %vm185_vm11, %v189_v49, %v191_v44  ;;  %v254_v55 = vrot.slane %v199_v52, 2  ;;  %1602 = vmatpush3.msk.msra.mxu0 %vm88_vm0, %v264_v21  ;;  %v249_v56 = vsel %vm246_vm14, %v247_v46, %v248_v50  ;;  %v190_v57 = vsel %vm185_vm11, %v187_v34, %v189_v49  ;;  %v1514_v46 = vld [vmem:[%s2142_s7 + $0x10] sm:$0xff] }
  0xf7   :  { %v252_v58 = vrot.slane %v192_v54, 2  ;;  %v260_v59 = vsel %vm240_vm3, 0.0, %v249_v56  ;;  %v222_v60 = vsel %vm218_vm15, 0.0, %v190_v57  ;;  %v250_v61 = vrot.slane %v190_v57, 2  ;;  %1625 = vmatprep.subr.mxu0 %v1490_v51 }
  0xf8   :  { %1619 = vmatprep.mubr.msk.f32.mxu1 %vm266_vm10, %v260_v59  ;;  %1598 = vmatprep.mubr.msk.f32.mxu0 %vm266_vm10, %v222_v60  ;;  %v223_v62 = vsel %vm219_vm2, 0.0, %v192_v54 }
  0xf9   :  { %v255_v63 = vsel %vm246_vm14, %v252_v58, %v254_v55  ;;  %1599 = vmatmul.mubr.msk.f32.gmra.mrb[6].mxu0 %vm266_vm10, %v223_v62  ;;  %v251_v0 = vsel %vm246_vm14, %v248_v50, %v250_v61  ;;  %v253_v1 = vsel %vm246_vm14, %v250_v61, %v252_v58 }
  0xfa   :  { %v261_v6 = vsel %vm241_vm4, 0.0, %v251_v0  ;;  %1603 = vmatprep.mubr.msk.f32.mxu0 %vm75_vm1, %v1855_v2  ;;  %v262_v7 = vsel %vm242_vm5, 0.0, %v253_v1  ;;  %v263_v9 = vsel %vm243_vm6, 0.0, %v255_v63  ;;  %v1281_v63 = vrot.slane %v1868_v4, 7 }
  0xfb   :  { %1620 = vmatmul.mubr.msk.f32.vlgmr.msra.gmra.mrb[0].mxu1 %vm266_vm10, %v261_v6  ;;  %v1283_v0 = vrot.slane %v1890_v10, 7 }
  0xfc   :  { %1622 = vmatprep.mubr.msk.f32.mxu1 %vm266_vm10, %v262_v7  ;;  %1650 = vmatpush3.msra.mxu1 %v974_v12 }
  0xfd   :  { %1604 = vmatmul.mubr.msk.f32.vlgmr.msra.gmra.mrb[4].mxu0 %vm75_vm1, %v1860_v3  ;;  %1657 = vmatprep.subr.mxu1 %v1509_v13  ;;  %v1284_v12 = vsel %vm185_vm11, %v1281_v63, %v1283_v0 }
  0xfe   :  { %1626 = vmatpush3.msra.mxu0 %v1490_v51  ;;  %1606 = vmatprep.mubr.msk.f32.mxu0 %vm75_vm1, %v1868_v4  ;;  %v1278_v51 = vrot.slane %v1855_v2, 7  ;;  %v1295_v37 = vsel %vm219_vm2, -inf, %v1284_v12 }
  0xff   :  { %1623 = vmatmul.mubr.msk.f32.gmra.mrb[2].mxu1 %vm266_vm10, %v263_v9  ;;  %1633 = vmatprep.subr.mxu0 %v654_v8 }
 0x100   :  { %v1290_v1 = vsel %vm185_vm11, 0.0, %v1278_v51 }
 0x101   :  { %1607 = vmatmul.mubr.msk.f32.gmra.mrb[6].mxu0 %vm75_vm1, %v1890_v10 }
 0x102   :  { %1627 = vmatprep.mubr.msk.f32.mxu0 %vm266_vm10, %v1917_v32 }
 0x105   :  { %1628 = vmatmul.mubr.msk.f32.vlgmr.msra.gmra.mrb[8].mxu0 %vm266_vm10, %v1913_v30 }
 0x106   :  { %1634 = vmatpush3.msra.mxu0 %v654_v8  ;;  %1630 = vmatprep.mubr.msk.f32.mxu0 %vm266_vm10, %v179_v41  ;;  %v1298_v8 = vrot.slane %v1290_v1, 2 }
 0x107   :  { %1641 = vmatprep.subr.mxu0 %v1499_v11 }
 0x109   :  { %1631 = vmatmul.mubr.msk.f32.gmra.mrb[10].mxu0 %vm266_vm10, %v1926_v40 }
 0x10a   :  { %1635 = vmatprep.mubr.msk.f32.mxu0 %vm266_vm10, %v220_v45 }
 0x10d   :  { %1636 = vmatmul.mubr.msk.f32.vlgmr.msra.gmra.mrb[8].mxu0 %vm266_vm10, %v221_v47  ;;  %v1279_v47 = vrot.slane %v1860_v3, 7 }
 0x10e   :  { %1642 = vmatpush3.msra.mxu0 %v1499_v11  ;;  %1638 = vmatprep.mubr.msk.f32.mxu0 %vm266_vm10, %v222_v60 }
 0x10f   :  { %v1282_v11 = vsel %vm185_vm11, %v1279_v47, %v1281_v63 }
 0x111   :  { %1639 = vmatmul.mubr.msk.f32.gmra.mrb[10].mxu0 %vm266_vm10, %v223_v62 }
 0x112   :  { %1643 = vmatprep.mubr.msk.f32.mxu0 %vm266_vm10, %v260_v59 }
 0x115   :  { %1644 = vmatmul.mubr.msk.f32.vlgmr.msra.gmra.mrb[8].mxu0 %vm266_vm10, %v261_v6  ;;  %v1280_v6 = vsel %vm185_vm11, %v1278_v51, %v1279_v47 }
 0x116   :  { %1646 = vmatprep.mubr.msk.f32.mxu0 %vm266_vm10, %v262_v7  ;;  %v1323_v7 = vld [vmem:[%s2144_s9] sm:$0xf]  ;;  %v1293_v22 = vsel %vm217_vm13, -inf, %v1280_v6 }
 0x119   :  { %1647 = vmatmul.mubr.msk.f32.gmra.mrb[10].mxu0 %vm266_vm10, %v263_v9  ;;  %v1299_v9 = vrot.slane %v1280_v6, 2 }
 0x1d0   :  { %v2019_v14 = vpop.f32.mrb[4].mxu0 }
 0x1d1   :  { %v2021_v15 = vpop.f32.mrb[5].mxu0 }
 0x1d4   :  { %v2023_v16 = vpop.f32.mrb[6].mxu0 }
 0x1d5   :  { %v2025_v17 = vpop.f32.mrb[7].mxu0 }
 0x1e8   :  { %v1645_v19 = vpop.f32.mrb[8].mxu0 }
 0x1e9   :  { %v926_v20 = vadd.f32 %v1645_v19, %v1504_v18  ;;  %v895_v21 = vpop.f32.mrb[9].mxu0  ;;  %v1301_v19 = vrot.slane %v1282_v11, 2 }
 0x1ea   :  { %v925_v24 = vadd.f32 %v1504_v18, %v895_v21  ;;  %v1300_v21 = vsel %vm246_vm14, %v1298_v8, %v1299_v9 }
 0x1eb   :  { %v930_v26 = vmax.f32 %v926_v20, 0.0  ;;  %v1303_v20 = vrot.slane %v1284_v12, 2 }
 0x1ec   :  { %v929_v27 = vmax.f32 %v925_v24, 0.0  ;;  %v1648_v28 = vpop.f32.mrb[10].mxu0  ;;  %v1291_v24 = vsel %vm185_vm11, %v1283_v0, 0.0 }
 0x1ed   :  { %v938_v29 = vrot.slane %v930_v26, 7  ;;  %v928_v30 = vadd.f32 %v1648_v28, %v1504_v18  ;;  %v905_v32 = vpop.f32.mrb[11].mxu0  ;;  %v1304_v23 = vsel %vm246_vm14, %v1301_v19, %v1303_v20 }
 0x1ee   :  { %v937_v33 = vrot.slane %v929_v27, 7  ;;  %v927_v34 = vadd.f32 %v1504_v18, %v905_v32  ;;  %v1305_v32 = vrot.slane %v1291_v24, 2 }
 0x1ef   :  { %v932_v35 = vmax.f32 %v928_v30, 0.0  ;;  %v1302_v30 = vsel %vm246_vm14, %v1299_v9, %v1301_v19 }
 0x1f0   :  { %v939_v36 = vsel %vm185_vm11, %v937_v33, %v938_v29  ;;  %v931_v38 = vmax.f32 %v927_v34, 0.0  ;;  %v949_v39 = vsel %vm185_vm11, 0.0, %v937_v33  ;;  %v1316_v33 = vmax.f32 %v1293_v22, %v1860_v3 }
 0x1f1   :  { %v958_v40 = vrot.slane %v939_v36, 2  ;;  %v942_v41 = vrot.slane %v932_v35, 7  ;;  %v951_v42 = vsel %vm216_vm12, 0.0, %v949_v39  ;;  %v957_v43 = vrot.slane %v949_v39, 2 }
 0x1f2   :  { %v940_v44 = vrot.slane %v931_v38, 7  ;;  %1651 = vmatprep.mubr.msk.f32.mxu1 %vm266_vm10, %v951_v42  ;;  %v952_v45 = vsel %vm217_vm13, 0.0, %v939_v36  ;;  %v1306_v39 = vsel %vm246_vm14, %v1303_v20, %v1305_v32  ;;  %v1318_v3 = vmax.f32 %v1295_v37, %v1890_v10 }
 0x1f3   :  { %v950_v49 = vsel %vm185_vm11, %v942_v41, 0.0  ;;  %1652 = vmatmul.mubr.msk.f32.vlgmr.msra.gmra.mrb[0].mxu1 %vm266_vm10, %v952_v45  ;;  %v959_v50 = vsel %vm246_vm14, %v957_v43, %v958_v40  ;;  %v1314_v48 = vsel %vm243_vm6, -inf, %v1306_v39 }
 0x1f4   :  { %v964_v52 = vrot.slane %v950_v49, 2  ;;  %1658 = vmatpush3.msra.mxu1 %v1509_v13  ;;  %v941_v54 = vsel %vm185_vm11, %v938_v29, %v940_v44  ;;  %v943_v55 = vsel %vm185_vm11, %v940_v44, %v942_v41  ;;  %v1292_v13 = vsel %vm216_vm12, -inf, %v1290_v1  ;;  %v1524_v41 = vld [vmem:[%s2145_s10] ss:$0 sm:$0xff]  ;;  %s1774_s10 = smov [#allocation5]  }
 0x1f5   :  { %v953_v56 = vsel %vm218_vm15, 0.0, %v941_v54  ;;  %v960_v57 = vrot.slane %v941_v54, 2  ;;  %v954_v58 = vsel %vm219_vm2, 0.0, %v943_v55  ;;  %v962_v59 = vrot.slane %v943_v55, 2  ;;  %1665 = vmatprep.subr.mxu1 %v1514_v46  ;;  %s1453_s24 = sshll.u32 %s1774_s10, 4  ;;  %s1454_s24 = int_to_ptr.vmem [resolvable:$true] %s1453_s24 }
 0x1f6   :  { %1654 = vmatprep.mubr.msk.f32.mxu1 %vm266_vm10, %v953_v56  ;;  %v970_v18 = vsel %vm240_vm3, 0.0, %v959_v50  ;;  %v1311_v29 = vsel %vm240_vm3, -inf, %v1300_v21  ;;  %s1746_s25 = scalar_lea.vmem %s1454_s24, 512  ;;  %p1751_p9 = scmp.lt.s32.totalorder %s1454_s24, %s1454_s24 }
 0x1f7   :  { %1655 = vmatmul.mubr.msk.f32.gmra.mrb[2].mxu1 %vm266_vm10, %v954_v58  ;;  %v961_v60 = vsel %vm246_vm14, %v958_v40, %v960_v57  ;;  %v963_v61 = vsel %vm246_vm14, %v960_v57, %v962_v59  ;;  %v965_v62 = vsel %vm246_vm14, %v962_v59, %v964_v52  ;;  %v1322_v40 = vmax.f32 %v1318_v3, %v1314_v48  ;;  %p1747_p8 = scmp.ne.s32.totalorder %s1454_s24, %s1746_s25  ;;  %p1752_p10 = scmp.lt.s32.totalorder %s1746_s25, %s1746_s25 }
 0x1f8   :  { %1659 = vmatprep.mubr.msk.f32.mxu1 %vm266_vm10, %v929_v27  ;;  %v1294_v27 = vsel %vm218_vm15, -inf, %v1282_v11  ;;  %v971_v28 = vsel %vm241_vm4, 0.0, %v961_v60  ;;  %v973_v36 = vsel %vm243_vm6, 0.0, %v965_v62 }
 0x1f9   :  { %v1317_v25 = vmax.f32 %v1294_v27, %v1868_v4  ;;  %p1753_p11 = por %p1752_p10, %p1751_p9 }
 0x1fb   :  { %1660 = vmatmul.mubr.msk.f32.vlgmr.msra.gmra.mrb[0].mxu1 %vm266_vm10, %v930_v26  ;;  %v1315_v26 = vmax.f32 %v1292_v13, %v1855_v2  ;;  %v972_v2 = vsel %vm242_vm5, 0.0, %v963_v61  ;;  %p1754_p12 = pnand %p1753_p11, %p1747_p8 }
 0x1fc   :  { %1666 = vmatpush3.msra.mxu1 %v1514_v46  ;;  %1662 = vmatprep.mubr.msk.f32.mxu1 %vm266_vm10, %v931_v38  ;;  %v1313_v38 = vsel %vm242_vm5, -inf, %v1304_v23 }
 0x1fd   :  { %1673 = vmatprep.subr.msk.mxu1 %vm88_vm0, %v1323_v7  ;;  %v1319_v34 = vmax.f32 %v1315_v26, %v1311_v29  ;;  %v1321_v31 = vmax.f32 %v1317_v25, %v1313_v38 }
 0x1ff   :  { %1663 = vmatmul.mubr.msk.f32.gmra.mrb[2].mxu1 %vm266_vm10, %v932_v35  ;;  %v1312_v35 = vsel %vm241_vm4, -inf, %v1302_v30 }
 0x200   :  { %1667 = vmatprep.mubr.msk.f32.mxu1 %vm266_vm10, %v970_v18  ;;  %v1320_v4 = vmax.f32 %v1316_v33, %v1312_v35 }
 0x203   :  { %1668 = vmatmul.mubr.msk.f32.vlgmr.msra.gmra.mrb[0].mxu1 %vm266_vm10, %v971_v28 }
 0x204   :  { %1674 = vmatpush3.msk.msra.mxu1 %vm88_vm0, %v1323_v7  ;;  %1670 = vmatprep.mubr.msk.f32.mxu1 %vm266_vm10, %v972_v2  ;;  %vm1443_vm0 = vcmask 261120  }
 0x207   :  { %1671 = vmatmul.mubr.msk.f32.gmra.mrb[2].mxu1 %vm266_vm10, %v973_v36 }
 0x208   :  { %1675 = vmatprep.mubr.msk.f32.mxu1 %vm75_vm1, %v1319_v34 }
 0x20b   :  { %1676 = vmatmul.mubr.msk.f32.vlgmr.msra.gmra.mrb[0].mxu1 %vm75_vm1, %v1320_v4 }
 0x20c   :  { %1678 = vmatprep.mubr.msk.f32.mxu1 %vm75_vm1, %v1321_v31 }
 0x20f   :  { %1679 = vmatmul.mubr.msk.f32.gmra.mrb[2].mxu1 %vm75_vm1, %v1322_v40 }
 0x2de   :  { %v1677_v53 = vpop.f32.mrb[0].mxu1 }
 0x2df   :  { %v1681_v42 = vadd.f32 %v1677_v53, %v2019_v14  ;;  %v1405_v10 = vpop.f32.mrb[1].mxu1 }
 0x2e0   :  { %v1682_v43 = vadd.f32 %v1405_v10, %v2021_v15 }
 0x2e1   :  { %v1436_v44 = vadd.f32 %v1681_v42, %v1524_v41 }
 0x2e2   :  { %v1435_v5 = vadd.f32 %v1682_v43, %v1524_v41  ;;  %v1680_v45 = vpop.f32.mrb[2].mxu1 }
 0x2e3   :  { %v1440_v46 = vmax.f32 %v1436_v44, 0.0  ;;  %v1683_v47 = vadd.f32 %v1680_v45, %v2023_v16  ;;  %v1415_v49 = vpop.f32.mrb[3].mxu1 }
 0x2e4   :  { %v1439_v50 = vmax.f32 %v1435_v5, 0.0  ;;  %v1684_v51 = vadd.f32 %v1415_v49, %v2025_v17 }
 0x2e5   :  { %1445 = vst.msk [vmem:[#allocation5 + $0x8] sm:$0xff] %vm1443_vm0, %v1440_v46  ;;  %v1438_v52 = vadd.f32 %v1683_v47, %v1524_v41 }
 0x2e6   :  { %1444 = vst.msk [vmem:[#allocation5] sm:$0xff] %vm1443_vm0, %v1439_v50  ;;  %v1437_v14 = vadd.f32 %v1684_v51, %v1524_v41 }
 0x2e7   :  { %v1442_v15 = vmax.f32 %v1438_v52, 0.0 }
 0x2e8   :  { %v1441_v54 = vmax.f32 %v1437_v14, 0.0 }
 0x2e9   :  { %1447 = vst.msk [vmem:[#allocation5 + $0x18] sm:$0xff] %vm1443_vm0, %v1442_v15 }
 0x2ea   :  { %1446 = vst.msk [vmem:[#allocation5 + $0x10] sm:$0xff] %vm1443_vm0, %v1441_v54 }
 0x2eb   :  { %1757 = shalt.err (!%p1754_p12)
}
 0x2ec   :  { %s1758_s1 = scalar_lea.hbm %s2146_s11, 512 }
 0x2ed   :  { %p1759_p13 = scmp.ne.s32.totalorder %s2146_s11, %s1758_s1  ;;  %p1762_p0 = scmp.lt.u32.totalorder %s1758_s1, %s2146_s11 }
 0x2ef   :  { %p1764_p1 = pnand %p1762_p0, %p1759_p13 }
 0x2f1   :  { %1767 = shalt.err (!%p1764_p1)
}
 0x2f2   :  { %s1775_s12 = smov 128   ;;  %s1776_s13 = smov 8  }
 0x2f3   :  { %1459 = dma.vmem_to_hbm [thread:$0]  %s1454_s24, 512, %s2146_s11, [#allocation4], %s1775_s12, %s1775_s12, %s1776_s13  }
 0x2f4   :  { %1770 = dma.done.wait [#allocation4], 512  }
 0x2f5   :  { %1771 = vsyncadd [#allocation4], 4294966784 }
 0x2f6   :  { %1463 = vsyncpa [#allocation3], 1 }
 0x2f7   :  { %1464 = vsyncpa [#allocation4], 1 }

</bundles_post_ra>
